<compile_context>
chip_gen: v6e
topology: v6e:2x2x1
jax: 0.10.0
libtpu: 0.0.40
codegen_flags: <defaults>
</compile_context>

<pallas_src>
import functools
import math

import jax
import jax.numpy as jnp
from jax.experimental import pallas as pl
from jax.experimental.pallas import tpu as pltpu

# Problem sizes (match the PyTorch snippet)
BATCH = 2
SEQ_LEN = 4
HIDDEN_DIM = 64
N_HEAD = 4
HEAD_DIM = HIDDEN_DIM // N_HEAD
DROPOUT = 0.1  # TODO(synk): dropout is identity in eval/inference mode; not applied in-kernel.


def _round_up(x, m):
    return (x + m - 1) // m * m


# ---- packed-parameter slab layout (row offsets 8-aligned for clean slices) ----
T_TOTAL = BATCH * SEQ_LEN                       # 8 rows (batch folded into rows)
WQKV_ROW = 0                                    # (H, 3H) fused qkv weight (q pre-scaled)
BQKV_ROW = HIDDEN_DIM                           # (1, 3H) fused qkv bias (q part pre-scaled)
WO_ROW = _round_up(BQKV_ROW + 1, 8)             # (H, H)  output-projection weight
BO_ROW = WO_ROW + HIDDEN_DIM                    # (1, H)  output-projection bias
MASK_ROW = _round_up(BO_ROW + 1, 8)             # (T, T)  additive block-diagonal batch mask
SLAB_ROWS = MASK_ROW + _round_up(T_TOTAL, 8)
SLAB_COLS = 3 * HIDDEN_DIM                      # 192


def mha_kernel(x_ref, slab_ref, o_ref, *, n_head, head_dim, hidden_dim, t_total):
    # x_ref:    (T, H) with T = B*S
    # slab_ref: (SLAB_ROWS, 3H) packed params + mask (single DMA)
    # o_ref:    (T, H)
    x = x_ref[...]

    wqkv = slab_ref[WQKV_ROW:WQKV_ROW + hidden_dim, :]          # (H, 3H)
    bqkv = slab_ref[BQKV_ROW:BQKV_ROW + 1, :]                   # (1, 3H)
    wo = slab_ref[WO_ROW:WO_ROW + hidden_dim, 0:hidden_dim]     # (H, H)
    bo = slab_ref[BO_ROW:BO_ROW + 1, 0:hidden_dim]              # (1, H)
    mask = slab_ref[MASK_ROW:MASK_ROW + t_total, 0:t_total]     # (T, T) additive

    # Fused Q/K/V projection: one lane-dense (T,H)@(H,3H) MXU matmul.
    # 1/sqrt(head_dim) is already folded into the q columns wrapper-side.
    qkv = jnp.dot(x, wqkv, preferred_element_type=jnp.float32) + bqkv   # (T, 3H)

    o_heads = []
    for h in range(n_head):                                     # static unroll (4 heads)
        q_h = qkv[:, h * head_dim:(h + 1) * head_dim]                               # (T, hd)
        k_h = qkv[:, hidden_dim + h * head_dim:hidden_dim + (h + 1) * head_dim]     # (T, hd)
        v_h = qkv[:, 2 * hidden_dim + h * head_dim:2 * hidden_dim + (h + 1) * head_dim]

        # scores = q_h @ k_h^T without materializing a transposed operand.
        s = jax.lax.dot_general(q_h, k_h, (((1,), (1,)), ((), ())),
                                preferred_element_type=jnp.float32) + mask          # (T, T)

        # Numerically stable softmax, exact divide (approx reciprocal not worth it
        # for 8 denominators per head).
        m = jnp.max(s, axis=-1, keepdims=True)
        e = jnp.exp(s - m)
        p = e / jnp.sum(e, axis=-1, keepdims=True)

        o_heads.append(jnp.dot(p, v_h, preferred_element_type=jnp.float32))         # (T, hd)

    # Re-assemble heads lane-dense, then ONE (T,H)@(H,H) output projection.
    o_cat = jnp.concatenate(o_heads, axis=-1)                    # (T, H)
    out = jnp.dot(o_cat, wo, preferred_element_type=jnp.float32) + bo               # (T, H)
    o_ref[...] = out.astype(o_ref.dtype)


def _pack_slab(params, batch, seq_len):
    """Pack all weights/biases + batch mask into one 8/lane-friendly f32 slab."""
    scale = 1.0 / math.sqrt(HEAD_DIM)
    wqkv = jnp.concatenate([params["wq"] * scale, params["wk"], params["wv"]], axis=1)  # (H, 3H)
    bqkv = jnp.concatenate([params["bq"] * scale, params["bk"], params["bv"]], axis=1)  # (1, 3H)

    t = batch * seq_len
    row_b = jnp.arange(t) // seq_len
    mask = jnp.where(row_b[:, None] == row_b[None, :], 0.0, -1e30).astype(jnp.float32)  # (T, T)

    slab = jnp.zeros((SLAB_ROWS, SLAB_COLS), jnp.float32)
    slab = slab.at[WQKV_ROW:WQKV_ROW + HIDDEN_DIM, :].set(wqkv)
    slab = slab.at[BQKV_ROW:BQKV_ROW + 1, :].set(bqkv)
    slab = slab.at[WO_ROW:WO_ROW + HIDDEN_DIM, 0:HIDDEN_DIM].set(params["wo"])
    slab = slab.at[BO_ROW:BO_ROW + 1, 0:HIDDEN_DIM].set(params["bo"])
    slab = slab.at[MASK_ROW:MASK_ROW + t, 0:t].set(mask)
    return slab


def multihead_self_attention(x, params, n_head=N_HEAD):
    """x: (B, S, H) float32. params: dict of (in,out)-layout weights/biases."""
    B, S, H = x.shape
    head_dim = H // n_head
    slab = _pack_slab(params, B, S)              # wrapper-side, single packed DMA
    x2 = x.reshape(B * S, H)                     # fold batch into rows (free)

    vmem = functools.partial(pl.BlockSpec, memory_space=pltpu.MemorySpace.VMEM)
    kernel = functools.partial(mha_kernel, n_head=n_head, head_dim=head_dim,
                               hidden_dim=H, t_total=B * S)

    out2 = pl.pallas_call(
        kernel,
        out_shape=jax.ShapeDtypeStruct((B * S, H), x.dtype),
        in_specs=[vmem(), vmem()],
        out_specs=vmem(),
    )(x2, slab)
    return out2.reshape(B, S, H)


def init_params(key, hidden_dim):
    """Deterministic init mimicking nn.Linear default (uniform(-1/sqrt(fan_in), ...))."""
    bound = 1.0 / math.sqrt(hidden_dim)
    keys = jax.random.split(key, 8)

    def lin(kw, kb):
        # weight stored as (in, out) == torch weight (out, in) transposed
        w = jax.random.uniform(kw, (hidden_dim, hidden_dim), jnp.float32, -bound, bound)
        b = jax.random.uniform(kb, (1, hidden_dim), jnp.float32, -bound, bound)
        return w, b

    wq, bq = lin(keys[0], keys[1])
    wk, bk = lin(keys[2], keys[3])
    wv, bv = lin(keys[4], keys[5])
    wo, bo = lin(keys[6], keys[7])
    return dict(wq=wq, bq=bq, wk=wk, bk=bk, wv=wv, bv=bv, wo=wo, bo=bo)


def reference_mha(x, params):
    """Pure-JAX reference on the unpacked params (also validates the slab packing)."""
    B, S, H = x.shape
    hp = jax.lax.Precision.HIGHEST
    q = jnp.dot(x, params["wq"], precision=hp) + params["bq"]
    k = jnp.dot(x, params["wk"], precision=hp) + params["bk"]
    v = jnp.dot(x, params["wv"], precision=hp) + params["bv"]

    def split(t):
        return t.reshape(B, S, N_HEAD, HEAD_DIM).transpose(0, 2, 1, 3)

    q, k, v = split(q), split(k), split(v)
    s = jnp.einsum("bhqd,bhkd->bhqk", q, k, precision=hp) / math.sqrt(HEAD_DIM)
    p = jax.nn.softmax(s, axis=-1)
    o = jnp.einsum("bhqk,bhkd->bhqd", p, v, precision=hp)
    o = o.transpose(0, 2, 1, 3).reshape(B, S, H)
    return jnp.dot(o, params["wo"], precision=hp) + params["bo"]


if __name__ == "__main__":
    key = jax.random.PRNGKey(0)
    kx, kp = jax.random.split(key)
    x = jax.random.normal(kx, (BATCH, SEQ_LEN, HIDDEN_DIM), dtype=jnp.float32)
    params = init_params(kp, HIDDEN_DIM)

    out = multihead_self_attention(x, params)
    out = jax.block_until_ready(out)

    ref = reference_mha(x, params)
    assert out.shape == (BATCH, SEQ_LEN, HIDDEN_DIM)
    # Exact-divide softmax (no approx reciprocal) -> tight tolerance.
    assert jnp.allclose(out, ref, atol=1e-4, rtol=1e-4), "mismatch vs reference"

    print("KERNEL_OK")
</pallas_src>

<mosaic_0001>
module attributes {stable_mosaic.version = 11 : i64} {
  func.func @mha_kernel(%arg0: memref<8x64xf32, #tpu.memory_space<vmem>>, %arg1: memref<152x192xf32, #tpu.memory_space<vmem>>, %arg2: memref<8x64xf32, #tpu.memory_space<vmem>>) attributes {dimension_semantics = [], scalar_prefetch = 0 : i64, scratch_operands = 0 : i64, tpu.core_type = #tpu.core_type<tc>} {
    %c0 = arith.constant 0 : index
    %c0_0 = arith.constant 0 : index
    %0 = vector.load %arg0[%c0, %c0_0] : memref<8x64xf32, #tpu.memory_space<vmem>>, vector<8x64xf32>
    %c0_1 = arith.constant 0 : index
    %c0_2 = arith.constant 0 : index
    %1 = vector.load %arg1[%c0_1, %c0_2] : memref<152x192xf32, #tpu.memory_space<vmem>>, vector<64x192xf32>
    %c64 = arith.constant 64 : index
    %c0_3 = arith.constant 0 : index
    %2 = vector.load %arg1[%c64, %c0_3] : memref<152x192xf32, #tpu.memory_space<vmem>>, vector<1x192xf32>
    %c72 = arith.constant 72 : index
    %c0_4 = arith.constant 0 : index
    %3 = vector.load %arg1[%c72, %c0_4] : memref<152x192xf32, #tpu.memory_space<vmem>>, vector<64x64xf32>
    %c136 = arith.constant 136 : index
    %c0_5 = arith.constant 0 : index
    %4 = vector.load %arg1[%c136, %c0_5] : memref<152x192xf32, #tpu.memory_space<vmem>>, vector<1x64xf32>
    %c144 = arith.constant 144 : index
    %c0_6 = arith.constant 0 : index
    %5 = vector.load %arg1[%c144, %c0_6] : memref<152x192xf32, #tpu.memory_space<vmem>>, vector<8x8xf32>
    %cst = arith.constant dense<0.000000e+00> : vector<8x192xf32>
    %6 = tpu.matmul %0, %1, %cst {dimension_numbers = #tpu.dot_dimension_numbers<[1], [0], [0], [1], [0, 0, 1, 1], [], []>} : vector<8x64xf32>, vector<64x192xf32>, vector<8x192xf32> -> vector<8x192xf32>
    %7 = vector.broadcast %2 : vector<1x192xf32> to vector<8x192xf32>
    %8 = arith.addf %6, %7 : vector<8x192xf32>
    %9 = vector.extract_strided_slice %8 {offsets = [0, 0], sizes = [8, 16], strides = [1, 1]} : vector<8x192xf32> to vector<8x16xf32>
    %10 = vector.extract_strided_slice %8 {offsets = [0, 64], sizes = [8, 16], strides = [1, 1]} : vector<8x192xf32> to vector<8x16xf32>
    %11 = vector.extract_strided_slice %8 {offsets = [0, 128], sizes = [8, 16], strides = [1, 1]} : vector<8x192xf32> to vector<8x16xf32>
    %cst_7 = arith.constant dense<0.000000e+00> : vector<8x8xf32>
    %12 = tpu.matmul %9, %10, %cst_7 {dimension_numbers = #tpu.dot_dimension_numbers<[1], [1], [0], [0], [0, 0, 1, 0], [], []>} : vector<8x16xf32>, vector<8x16xf32>, vector<8x8xf32> -> vector<8x8xf32>
    %13 = arith.addf %12, %5 : vector<8x8xf32>
    %cst_8 = arith.constant dense<0xFF800000> : vector<8xf32>
    %14 = vector.multi_reduction <maximumf>, %13, %cst_8 [1] : vector<8x8xf32> to vector<8xf32>
    %15 = vector.shape_cast %14 : vector<8xf32> to vector<8x1xf32>
    %16 = vector.broadcast %15 : vector<8x1xf32> to vector<8x8xf32>
    %17 = arith.subf %13, %16 : vector<8x8xf32>
    %18 = math.exp %17 : vector<8x8xf32>
    %cst_9 = arith.constant dense<0.000000e+00> : vector<8xf32>
    %19 = vector.multi_reduction <add>, %18, %cst_9 [1] : vector<8x8xf32> to vector<8xf32>
    %20 = vector.shape_cast %19 : vector<8xf32> to vector<8x1xf32>
    %21 = vector.broadcast %20 : vector<8x1xf32> to vector<8x8xf32>
    %22 = arith.divf %18, %21 : vector<8x8xf32>
    %cst_10 = arith.constant dense<0.000000e+00> : vector<8x16xf32>
    %23 = tpu.matmul %22, %11, %cst_10 {dimension_numbers = #tpu.dot_dimension_numbers<[1], [0], [0], [1], [0, 0, 1, 1], [], []>} : vector<8x8xf32>, vector<8x16xf32>, vector<8x16xf32> -> vector<8x16xf32>
    %24 = vector.extract_strided_slice %8 {offsets = [0, 16], sizes = [8, 16], strides = [1, 1]} : vector<8x192xf32> to vector<8x16xf32>
    %25 = vector.extract_strided_slice %8 {offsets = [0, 80], sizes = [8, 16], strides = [1, 1]} : vector<8x192xf32> to vector<8x16xf32>
    %26 = vector.extract_strided_slice %8 {offsets = [0, 144], sizes = [8, 16], strides = [1, 1]} : vector<8x192xf32> to vector<8x16xf32>
    %cst_11 = arith.constant dense<0.000000e+00> : vector<8x8xf32>
    %27 = tpu.matmul %24, %25, %cst_11 {dimension_numbers = #tpu.dot_dimension_numbers<[1], [1], [0], [0], [0, 0, 1, 0], [], []>} : vector<8x16xf32>, vector<8x16xf32>, vector<8x8xf32> -> vector<8x8xf32>
    %28 = arith.addf %27, %5 : vector<8x8xf32>
    %cst_12 = arith.constant dense<0xFF800000> : vector<8xf32>
    %29 = vector.multi_reduction <maximumf>, %28, %cst_12 [1] : vector<8x8xf32> to vector<8xf32>
    %30 = vector.shape_cast %29 : vector<8xf32> to vector<8x1xf32>
    %31 = vector.broadcast %30 : vector<8x1xf32> to vector<8x8xf32>
    %32 = arith.subf %28, %31 : vector<8x8xf32>
    %33 = math.exp %32 : vector<8x8xf32>
    %cst_13 = arith.constant dense<0.000000e+00> : vector<8xf32>
    %34 = vector.multi_reduction <add>, %33, %cst_13 [1] : vector<8x8xf32> to vector<8xf32>
    %35 = vector.shape_cast %34 : vector<8xf32> to vector<8x1xf32>
    %36 = vector.broadcast %35 : vector<8x1xf32> to vector<8x8xf32>
    %37 = arith.divf %33, %36 : vector<8x8xf32>
    %cst_14 = arith.constant dense<0.000000e+00> : vector<8x16xf32>
    %38 = tpu.matmul %37, %26, %cst_14 {dimension_numbers = #tpu.dot_dimension_numbers<[1], [0], [0], [1], [0, 0, 1, 1], [], []>} : vector<8x8xf32>, vector<8x16xf32>, vector<8x16xf32> -> vector<8x16xf32>
    %39 = vector.extract_strided_slice %8 {offsets = [0, 32], sizes = [8, 16], strides = [1, 1]} : vector<8x192xf32> to vector<8x16xf32>
    %40 = vector.extract_strided_slice %8 {offsets = [0, 96], sizes = [8, 16], strides = [1, 1]} : vector<8x192xf32> to vector<8x16xf32>
    %41 = vector.extract_strided_slice %8 {offsets = [0, 160], sizes = [8, 16], strides = [1, 1]} : vector<8x192xf32> to vector<8x16xf32>
    %cst_15 = arith.constant dense<0.000000e+00> : vector<8x8xf32>
    %42 = tpu.matmul %39, %40, %cst_15 {dimension_numbers = #tpu.dot_dimension_numbers<[1], [1], [0], [0], [0, 0, 1, 0], [], []>} : vector<8x16xf32>, vector<8x16xf32>, vector<8x8xf32> -> vector<8x8xf32>
    %43 = arith.addf %42, %5 : vector<8x8xf32>
    %cst_16 = arith.constant dense<0xFF800000> : vector<8xf32>
    %44 = vector.multi_reduction <maximumf>, %43, %cst_16 [1] : vector<8x8xf32> to vector<8xf32>
    %45 = vector.shape_cast %44 : vector<8xf32> to vector<8x1xf32>
    %46 = vector.broadcast %45 : vector<8x1xf32> to vector<8x8xf32>
    %47 = arith.subf %43, %46 : vector<8x8xf32>
    %48 = math.exp %47 : vector<8x8xf32>
    %cst_17 = arith.constant dense<0.000000e+00> : vector<8xf32>
    %49 = vector.multi_reduction <add>, %48, %cst_17 [1] : vector<8x8xf32> to vector<8xf32>
    %50 = vector.shape_cast %49 : vector<8xf32> to vector<8x1xf32>
    %51 = vector.broadcast %50 : vector<8x1xf32> to vector<8x8xf32>
    %52 = arith.divf %48, %51 : vector<8x8xf32>
    %cst_18 = arith.constant dense<0.000000e+00> : vector<8x16xf32>
    %53 = tpu.matmul %52, %41, %cst_18 {dimension_numbers = #tpu.dot_dimension_numbers<[1], [0], [0], [1], [0, 0, 1, 1], [], []>} : vector<8x8xf32>, vector<8x16xf32>, vector<8x16xf32> -> vector<8x16xf32>
    %54 = vector.extract_strided_slice %8 {offsets = [0, 48], sizes = [8, 16], strides = [1, 1]} : vector<8x192xf32> to vector<8x16xf32>
    %55 = vector.extract_strided_slice %8 {offsets = [0, 112], sizes = [8, 16], strides = [1, 1]} : vector<8x192xf32> to vector<8x16xf32>
    %56 = vector.extract_strided_slice %8 {offsets = [0, 176], sizes = [8, 16], strides = [1, 1]} : vector<8x192xf32> to vector<8x16xf32>
    %cst_19 = arith.constant dense<0.000000e+00> : vector<8x8xf32>
    %57 = tpu.matmul %54, %55, %cst_19 {dimension_numbers = #tpu.dot_dimension_numbers<[1], [1], [0], [0], [0, 0, 1, 0], [], []>} : vector<8x16xf32>, vector<8x16xf32>, vector<8x8xf32> -> vector<8x8xf32>
    %58 = arith.addf %57, %5 : vector<8x8xf32>
    %cst_20 = arith.constant dense<0xFF800000> : vector<8xf32>
    %59 = vector.multi_reduction <maximumf>, %58, %cst_20 [1] : vector<8x8xf32> to vector<8xf32>
    %60 = vector.shape_cast %59 : vector<8xf32> to vector<8x1xf32>
    %61 = vector.broadcast %60 : vector<8x1xf32> to vector<8x8xf32>
    %62 = arith.subf %58, %61 : vector<8x8xf32>
    %63 = math.exp %62 : vector<8x8xf32>
    %cst_21 = arith.constant dense<0.000000e+00> : vector<8xf32>
    %64 = vector.multi_reduction <add>, %63, %cst_21 [1] : vector<8x8xf32> to vector<8xf32>
    %65 = vector.shape_cast %64 : vector<8xf32> to vector<8x1xf32>
    %66 = vector.broadcast %65 : vector<8x1xf32> to vector<8x8xf32>
    %67 = arith.divf %63, %66 : vector<8x8xf32>
    %cst_22 = arith.constant dense<0.000000e+00> : vector<8x16xf32>
    %68 = tpu.matmul %67, %56, %cst_22 {dimension_numbers = #tpu.dot_dimension_numbers<[1], [0], [0], [1], [0, 0, 1, 1], [], []>} : vector<8x8xf32>, vector<8x16xf32>, vector<8x16xf32> -> vector<8x16xf32>
    %69 = tpu.concatenate %23, %38, %53, %68 in 1 : vector<8x16xf32>, vector<8x16xf32>, vector<8x16xf32>, vector<8x16xf32> -> vector<8x64xf32>
    %cst_23 = arith.constant dense<0.000000e+00> : vector<8x64xf32>
    %70 = tpu.matmul %69, %3, %cst_23 {dimension_numbers = #tpu.dot_dimension_numbers<[1], [0], [0], [1], [0, 0, 1, 1], [], []>} : vector<8x64xf32>, vector<64x64xf32>, vector<8x64xf32> -> vector<8x64xf32>
    %71 = vector.broadcast %4 : vector<1x64xf32> to vector<8x64xf32>
    %72 = arith.addf %70, %71 : vector<8x64xf32>
    %c0_24 = arith.constant 0 : index
    %c0_25 = arith.constant 0 : index
    %73 = vector.load %arg2[%c0_24, %c0_25] : memref<8x64xf32, #tpu.memory_space<vmem>>, vector<8x64xf32>
    tpu.vector_store %arg2[%c0_24, %c0_25], %72 {strides = array<i32>} : memref<8x64xf32, #tpu.memory_space<vmem>>, vector<8x64xf32>,
    return
  }
}

</mosaic_0001>

<bundles_post_ra>
// kernel: tpu_custom_call.1
= control target key start
LH: loop header
LB: loop body
LE: loop exit
PB: predicated region body
PF: predicated region fallthrough
CT: control target
= control target key end

     0   :  { %7 = vsyncpa [#allocation3], 0  ;;  %s1242_s0 = inlined_call_operand.hbm [shape: f32[8,64], index: 0, kind: input, shape index: {}]   ;;  %s1243_s1 = inlined_call_operand.hbm [shape: f32[152,192], index: 1, kind: input, shape index: {}]   ;;  %s1244_s2 = inlined_call_operand.hbm [shape: f32[8,64], index: 2, kind: output, shape index: {}]  }
   0x1   :  { %8 = vsyncpa [#allocation6], 0 }
   0x2   :  { %9 = vsyncpa [#allocation4], 0  ;;  %s1112_s9 = smov [#allocation2]   ;;  %s1113_s11 = smov [#allocation5]  }
   0x3   :  { %s16_s10 = sshll.u32 %s1112_s9, 4  ;;  %s25_s12 = sshll.u32 %s1113_s11, 4  ;;  %s17_s10 = int_to_ptr.vmem [resolvable:$true] %s16_s10  ;;  %s26_s12 = int_to_ptr.vmem [resolvable:$true] %s25_s12 }
   0x4   :  { %s1054_s13 = scalar_lea.vmem %s17_s10, 128  ;;  %p1059_p1 = scmp.lt.s32.totalorder %s17_s10, %s17_s10 }
   0x5   :  { %p1055_p0 = scmp.ne.s32.totalorder %s17_s10, %s1054_s13  ;;  %p1060_p2 = scmp.lt.s32.totalorder %s1054_s13, %s1054_s13 }
   0x7   :  { %p1061_p3 = por %p1060_p2, %p1059_p1 }
   0x9   :  { %p1062_p4 = pnand %p1061_p3, %p1055_p0 }
   0xb   :  { %1065 = shalt.err (!%p1062_p4)
}
   0xc   :  { %19 = dma.hbm_to_vmem [thread:$0]  %s1242_s0, 128, %s17_s10, [#allocation3]  }
   0xd   :  { %s1074_s16 = scalar_lea.vmem %s26_s12, 4864  ;;  %p1079_p6 = scmp.lt.s32.totalorder %s26_s12, %s26_s12 }
   0xe   :  { %p1075_p5 = scmp.ne.s32.totalorder %s26_s12, %s1074_s16  ;;  %p1080_p7 = scmp.lt.s32.totalorder %s1074_s16, %s1074_s16 }
  0x10   :  { %p1081_p8 = por %p1080_p7, %p1079_p6 }
  0x12   :  { %p1082_p9 = pnand %p1081_p8, %p1075_p5 }
  0x14   :  { %1085 = shalt.err (!%p1082_p9)
}
  0x15   :  { %s1114_s17 = smov 256   ;;  %s1115_s18 = smov 16  }
  0x16   :  { %31 = dma.hbm_to_vmem [thread:$0]  %s1243_s1, 4864, %s26_s12, [#allocation6], %s1114_s17, %s1114_s17, %s1115_s18  }
  0x17   :  { %1106 = dma.done.wait [#allocation3], 128  }
  0x18   :  { %1107 = vsyncadd [#allocation3], 4294967168 }
  0x19   :  { %1108 = dma.done.wait [#allocation6], 4864  }
  0x1a   :  { %1109 = vsyncadd [#allocation6], 4294962432  ;;  %v1116_v0 = vmov 0.0   ;;  %v54_v1 = vld [vmem:[#allocation5 + $0x78] sm:$0xff]  ;;  %v53_v2 = vld [vmem:[#allocation5 + $0x70] sm:$0xff]  ;;  %vm78_vm0 = vcmask 523264   ;;  %v68_v18 = vlaneseq }
  0x1b   :  { %146 = vmatprep.mubr.f32.mxu0 %v1116_v0  ;;  %958 = vmatprep.subr.mxu1 %v1116_v0  ;;  %v52_v3 = vld [vmem:[#allocation5 + $0x68] sm:$0xff]  ;;  %v51_v4 = vld [vmem:[#allocation5 + $0x60] sm:$0xff]  ;;  %v50_v5 = vld [vmem:[#allocation5 + $0x58] sm:$0xff]  ;;  %vm1117_vm1 = vmmov 0   ;;  %s1118_s0 = smov 48   ;;  %s1119_s1 = smov 64  }
  0x1c   :  { %98 = vmatprep.subr.mxu0 %v54_v1  ;;  %v49_v6 = vld [vmem:[#allocation5 + $0x50] sm:$0xff]  ;;  %v48_v7 = vld [vmem:[#allocation5 + $0x48] sm:$0xff]  ;;  %v47_v8 = vld [vmem:[#allocation5 + $0x40] sm:$0xff]  ;;  %v69_v19 = vshrl.u32 %v68_v18, 7  ;;  %960 = vmatprep.mubr.msk.f32.mxu1 %vm1117_vm1, %v1116_v0  ;;  %vm156_vm2 = vcmask 130048   ;;  %vm231_vm3 = vcmask 64512  }
  0x1d   :  { %99 = vmatpush1.msra.mxu0 %v53_v2  ;;  %v46_v9 = vld [vmem:[#allocation5 + $0x38] sm:$0xff]  ;;  %v45_v10 = vld [vmem:[#allocation5 + $0x30] sm:$0xff]  ;;  %v44_v11 = vld [vmem:[#allocation5 + $0x28] sm:$0xff]  ;;  %s1120_s21 = smov 112   ;;  %s1121_s22 = smov 96   ;;  %vm825_vm4 = vcmask 261120  }
  0x1e   :  { %100 = vmatprep.subr.mxu0 %v52_v3  ;;  %v43_v12 = vld [vmem:[#allocation5 + $0x20] sm:$0xff]  ;;  %v42_v13 = vld [vmem:[#allocation5 + $0x18] sm:$0xff]  ;;  %v41_v14 = vld [vmem:[#allocation5 + $0x10] sm:$0xff]  ;;  %v70_v20 = vsub.s32 0, %v69_v19  ;;  %v74_v25 = vsub.s32 1, %v69_v19  ;;  %s1122_s23 = smov 32  }
  0x1f   :  { %101 = vmatpush1.msra.mxu0 %v51_v4  ;;  %v40_v15 = vld [vmem:[#allocation5 + $0x8] sm:$0xff]  ;;  %v39_v16 = vld [vmem:[#allocation5] sm:$0xff]  ;;  %v38_v17 = vld [vmem:[#allocation2] sm:$0xff]  ;;  %s1123_s24 = smov 80   ;;  %vm827_vm5 = vcmask 392192   ;;  %s1124_s25 = smov [#allocation7]  }
  0x20   :  { %102 = vmatprep.subr.mxu0 %v50_v5  ;;  %v56_v21 = vld [vmem:[#allocation5 + $0x80] ss:$8 sm:$0x3]  ;;  %s909_s26 = sshll.u32 %s1124_s25, 4  ;;  %s910_s26 = int_to_ptr.vmem [resolvable:$true] %s909_s26 }
  0x21   :  { %103 = vmatpush1.msra.mxu0 %v49_v6  ;;  %v71_v22 = vrot.slane %v56_v21, %v70_v20  ;;  %v75_v26 = vrot.slane %v56_v21, %v74_v25  ;;  %v1170_v30 = vld [vmem:[#allocation5 + $0x120] sm:$0xff]  ;;  %s1086_s27 = scalar_lea.vmem %s910_s26, 128  ;;  %p1091_p11 = scmp.lt.s32.totalorder %s910_s26, %s910_s26 }
  0x22   :  { %104 = vmatprep.subr.mxu0 %v48_v7  ;;  %p1087_p10 = scmp.ne.s32.totalorder %s910_s26, %s1086_s27  ;;  %p1092_p12 = scmp.lt.s32.totalorder %s1086_s27, %s1086_s27 }
  0x23   :  { %105 = vmatpush1.msra.mxu0 %v47_v8 }
  0x24   :  { %106 = vmatprep.subr.mxu0 %v46_v9  ;;  %p1093_p13 = por %p1092_p12, %p1091_p11 }
  0x25   :  { %107 = vmatpush1.msra.mxu0 %v45_v10 }
  0x26   :  { %108 = vmatprep.subr.mxu0 %v44_v11  ;;  %p1094_p0 = pnand %p1093_p13, %p1087_p10 }
  0x27   :  { %109 = vmatpush1.msra.mxu0 %v43_v12 }
  0x28   :  { %110 = vmatprep.subr.mxu0 %v42_v13 }
  0x29   :  { %111 = vmatpush1.msra.mxu0 %v41_v14 }
  0x2a   :  { %112 = vmatprep.subr.mxu0 %v40_v15 }
  0x2b   :  { %113 = vmatpush1.msra.mxu0 %v39_v16 }
  0x2c   :  { %919 = vmatmul.mubr.msk.f32.vlgmr.msra.gmra.mxu0 %vm78_vm0, %v38_v17  ;;  %998 = vmatprep.subr.mxu0 %v1116_v0 }
  0x2d   :  { %1014 = vmatprep.mubr.msk.f32.mxu0 %vm1117_vm1, %v1116_v0 }
  0xec   :  { %v148_v23 = vpop.f32.mrf.mxu0 }
  0xed   :  { %v1155_v24 = vadd.f32 %v148_v23, %v71_v22 }
  0xee   :  { %v150_v27 = vpop.f32.mrf.mxu0 }
  0xef   :  { %318 = vrot.lane.b32.xlu1 %v1155_v24, %s1118_s0  ;;  %154 = vrot.lane.b32.xlu0 %v1155_v24, %s1119_s1  ;;  %v1162_v29 = vadd.f32 %v150_v27, %v75_v26 }
 0x161   :  { %v155_v28 = vpop.permute.xlu0 %154  ;;  %v319_v40 = vpop.permute.xlu1 %318 }
 0x162   :  { %959 = vmatpush3.xpose.msk.msra.mxu1 %vm156_vm2, %v155_v28 }
 0x163   :  { %963 = vmatprep.subr.mxu1 %v1116_v0 }
 0x165   :  { %961 = vmatmul.mubr.msk.f32.vlgmr.msra.gmra.mxu1 %vm156_vm2, %v1155_v24 }
 0x166   :  { %964 = vmatpush3.msra.mxu1 %v1162_v29  ;;  %965 = vmatprep.mubr.msk.f32.mxu1 %vm1117_vm1, %v1116_v0 }
 0x167   :  { %968 = vmatprep.subr.mxu1 %v1116_v0 }
 0x225   :  { %v227_v31 = vpop.f32.mrf.mxu1 }
 0x226   :  { %v228_v32 = vadd.f32 %v227_v31, %v1170_v30 }
 0x227   :  { %v962_v33 = vpop.f32.mrf.mxu1 }
 0x228   :  { %v232_v34 = vsel %vm231_vm3, %v228_v32, -inf  ;;  %v62_v33 = vld [vmem:[#allocation5 + $0xe0] sm:$0xff] }
 0x229   :  { %233 = vmax.xlane.f32.xlu0 %v232_v34  ;;  %v61_v34 = vld [vmem:[#allocation5 + $0xd0] sm:$0xff] }
 0x23f   :  { %406 = vrot.lane.b32.xlu0 %v1162_v29, %s1120_s21 }
 0x2b2   :  { %v234_v35 = vpop.xlane.xlu0 %233 }
 0x2b3   :  { %v235_v36 = vsub.f32 %v228_v32, %v234_v35  ;;  %v63_v32 = vld [vmem:[#allocation5 + $0xf0] sm:$0xff]  ;;  %v60_v35 = vld [vmem:[#allocation5 + $0xc0] sm:$0xff] }
 0x2b5   :  { %v236_v37 = vmul.f32 1.442695, %v235_v36  ;;  %v59_v36 = vld [vmem:[#allocation5 + $0xb0] sm:$0xff] }
 0x2b6   :  { %v407_v45 = vpop.permute.xlu0 %406 }
 0x2b7   :  { %1030 = vpow2.f32 %v236_v37  ;;  %v58_v37 = vld [vmem:[#allocation5 + $0xa0] sm:$0xff] }
 0x2c4   :  { %v1031_v38 = vpop.eup %1030 }
 0x2c5   :  { %v238_v39 = vsel %vm231_vm3, %v1031_v38, 0.0 }
 0x2c6   :  { %239 = vadd.xlane.f32.xlu1 %v238_v39 }
 0x2d7   :  { %316 = vrot.lane.b32.xlu1 %v1155_v24, %s1120_s21 }
 0x34f   :  { %v240_v41 = vpop.xlane.xlu1 %239 }
 0x350   :  { %1032 = vrcp.f32 %v240_v41 }
 0x353   :  { %v317_v44 = vpop.permute.xlu1 %316 }
 0x35d   :  { %v1033_v42 = vpop.eup %1032 }
 0x35e   :  { %v242_v43 = vmul.f32 %v1033_v42, %v1031_v38  ;;  %v57_v38 = vld [vmem:[#allocation5 + $0x90] sm:$0xff] }
 0x360   :  { %966 = vmatmul.mubr.msk.f32.vlgmr.msra.gmra.mxu1 %vm231_vm3, %v242_v43 }
 0x361   :  { %969 = vmatpush3.xpose.msk.msra.mxu1 %vm156_vm2, %v319_v40  ;;  %970 = vmatprep.mubr.msk.f32.mxu1 %vm1117_vm1, %v1116_v0 }
 0x362   :  { %973 = vmatprep.subr.mxu1 %v1116_v0 }
 0x364   :  { %971 = vmatmul.mubr.msk.f32.vlgmr.msra.gmra.mxu1 %vm156_vm2, %v317_v44 }
 0x365   :  { %974 = vmatpush3.msra.mxu1 %v407_v45  ;;  %975 = vmatprep.mubr.msk.f32.mxu1 %vm1117_vm1, %v1116_v0 }
 0x366   :  { %978 = vmatprep.subr.mxu1 %v1116_v0 }
 0x420   :  { %v1186_v46 = vpop.f32.mrf.mxu1 }
 0x422   :  { %v967_v47 = vpop.f32.mrf.mxu1 }
 0x424   :  { %v390_v48 = vpop.f32.mrf.mxu1 }
 0x425   :  { %v391_v49 = vadd.f32 %v390_v48, %v1170_v30  ;;  %v65_v48 = vld [vmem:[#allocation5 + $0x110] ss:$0 sm:$0xff] }
 0x426   :  { %v972_v50 = vpop.f32.mrf.mxu1 }
 0x427   :  { %v394_v51 = vsel %vm231_vm3, %v391_v49, -inf }
 0x428   :  { %395 = vmax.xlane.f32.xlu1 %v394_v51 }
 0x439   :  { %482 = vrot.lane.b32.xlu1 %v1155_v24, %s1121_s22 }
 0x4b1   :  { %v396_v52 = vpop.xlane.xlu1 %395 }
 0x4b2   :  { %v397_v53 = vsub.f32 %v391_v49, %v396_v52 }
 0x4b4   :  { %v398_v54 = vmul.f32 1.442695, %v397_v53 }
 0x4b5   :  { %v483_v61 = vpop.permute.xlu1 %482 }
 0x4b6   :  { %1034 = vpow2.f32 %v398_v54 }
 0x4c3   :  { %v1035_v55 = vpop.eup %1034 }
 0x4c4   :  { %v400_v56 = vsel %vm231_vm3, %v1035_v55, 0.0 }
 0x4c5   :  { %401 = vadd.xlane.f32.xlu0 %v400_v56 }
 0x4db   :  { %484 = vrot.lane.b32.xlu0 %v1155_v24, %s1122_s23 }
 0x54e   :  { %v402_v57 = vpop.xlane.xlu0 %401 }
 0x54f   :  { %1036 = vrcp.f32 %v402_v57 }
 0x552   :  { %v485_v60 = vpop.permute.xlu0 %484 }
 0x55c   :  { %v1037_v58 = vpop.eup %1036 }
 0x55d   :  { %v404_v59 = vmul.f32 %v1037_v58, %v1035_v55 }
 0x55f   :  { %976 = vmatmul.mubr.msk.f32.vlgmr.msra.gmra.mxu1 %vm231_vm3, %v404_v59 }
 0x560   :  { %979 = vmatpush3.xpose.msk.msra.mxu1 %vm156_vm2, %v485_v60  ;;  %980 = vmatprep.mubr.msk.f32.mxu1 %vm1117_vm1, %v1116_v0 }
 0x561   :  { %983 = vmatprep.subr.mxu1 %v1116_v0 }
 0x563   :  { %981 = vmatmul.mubr.msk.f32.vlgmr.msra.gmra.mxu1 %vm156_vm2, %v483_v61 }
 0x564   :  { %985 = vmatprep.mubr.msk.f32.mxu1 %vm1117_vm1, %v1116_v0 }
 0x61f   :  { %v478_v62 = vpop.f32.mrf.mxu1 }
 0x621   :  { %v977_v63 = vpop.f32.mrf.mxu1 }
 0x623   :  { %v556_v1 = vpop.f32.mrf.mxu1 }
 0x624   :  { %v557_v2 = vadd.f32 %v556_v1, %v1170_v30 }
 0x625   :  { %v982_v3 = vpop.f32.mrf.mxu1 }
 0x626   :  { %v560_v4 = vsel %vm231_vm3, %v557_v2, -inf }
 0x627   :  { %561 = vmax.xlane.f32.xlu0 %v560_v4 }
 0x63d   :  { %571 = vrot.lane.b32.xlu0 %v1162_v29, %s1121_s22 }
 0x641   :  { %647 = vrot.lane.b32.xlu0 %v1155_v24, %s1123_s24 }
 0x6b0   :  { %v562_v5 = vpop.xlane.xlu0 %561 }
 0x6b1   :  { %v563_v6 = vsub.f32 %v557_v2, %v562_v5 }
 0x6b3   :  { %v564_v7 = vmul.f32 1.442695, %v563_v6 }
 0x6b4   :  { %v572_v8 = vpop.permute.xlu0 %571 }
 0x6b5   :  { %1038 = vpow2.f32 %v564_v7  ;;  %984 = vmatpush3.msra.mxu1 %v572_v8 }
 0x6b6   :  { %988 = vmatprep.subr.mxu1 %v1116_v0 }
 0x6b8   :  { %v648_v15 = vpop.permute.xlu0 %647 }
 0x6c2   :  { %v1039_v9 = vpop.eup %1038 }
 0x6c3   :  { %v566_v10 = vsel %vm231_vm3, %v1039_v9, 0.0 }
 0x6c4   :  { %567 = vadd.xlane.f32.xlu1 %v566_v10 }
 0x6d5   :  { %649 = vrot.lane.b32.xlu1 %v1155_v24, %s1115_s18 }
 0x74d   :  { %v568_v11 = vpop.xlane.xlu1 %567 }
 0x74e   :  { %1040 = vrcp.f32 %v568_v11 }
 0x751   :  { %v650_v14 = vpop.permute.xlu1 %649 }
 0x75b   :  { %v1041_v12 = vpop.eup %1040 }
 0x75c   :  { %v570_v13 = vmul.f32 %v1041_v12, %v1039_v9 }
 0x75e   :  { %986 = vmatmul.mubr.msk.f32.vlgmr.msra.gmra.mxu1 %vm231_vm3, %v570_v13 }
 0x75f   :  { %989 = vmatpush3.xpose.msk.msra.mxu1 %vm156_vm2, %v650_v14  ;;  %990 = vmatprep.mubr.msk.f32.mxu1 %vm1117_vm1, %v1116_v0 }
 0x760   :  { %993 = vmatprep.subr.mxu1 %v1116_v0 }
 0x762   :  { %991 = vmatmul.mubr.msk.f32.vlgmr.msra.gmra.mxu1 %vm156_vm2, %v648_v15 }
 0x763   :  { %995 = vmatprep.mubr.msk.f32.mxu1 %vm1117_vm1, %v1116_v0 }
 0x81e   :  { %v643_v16 = vpop.f32.mrf.mxu1 }
 0x820   :  { %v987_v17 = vpop.f32.mrf.mxu1 }
 0x822   :  { %v721_v18 = vpop.f32.mrf.mxu1 }
 0x823   :  { %v722_v19 = vadd.f32 %v721_v18, %v1170_v30 }
 0x824   :  { %v992_v20 = vpop.f32.mrf.mxu1 }
 0x825   :  { %v725_v21 = vsel %vm231_vm3, %v722_v19, -inf }
 0x826   :  { %726 = vmax.xlane.f32.xlu0 %v725_v21 }
 0x83c   :  { %736 = vrot.lane.b32.xlu0 %v1162_v29, %s1123_s24  ;;  %v64_v29 = vld [vmem:[#allocation5 + $0x100] sm:$0xff] }
 0x83d   :  { %999 = vmatpush3.msra.mxu0 %v64_v29 }
 0x83e   :  { %1000 = vmatprep.subr.mxu0 %v1116_v0 }
 0x83f   :  { %1001 = vmatpush3.msra.mxu0 %v63_v32 }
 0x840   :  { %817 = vrot.lane.b32.xlu0 %v643_v16, %s1122_s23  ;;  %1002 = vmatprep.subr.mxu0 %v1116_v0 }
 0x841   :  { %1003 = vmatpush3.msra.mxu0 %v62_v33 }
 0x842   :  { %1004 = vmatprep.subr.mxu0 %v1116_v0 }
 0x843   :  { %1005 = vmatpush3.msra.mxu0 %v61_v34 }
 0x844   :  { %1006 = vmatprep.subr.mxu0 %v1116_v0 }
 0x845   :  { %1007 = vmatpush3.msra.mxu0 %v60_v35 }
 0x846   :  { %1008 = vmatprep.subr.mxu0 %v1116_v0 }
 0x847   :  { %1009 = vmatpush3.msra.mxu0 %v59_v36 }
 0x848   :  { %1010 = vmatprep.subr.mxu0 %v1116_v0 }
 0x849   :  { %1011 = vmatpush3.msra.mxu0 %v58_v37 }
 0x84a   :  { %1012 = vmatprep.subr.mxu0 %v1116_v0 }
 0x84b   :  { %1013 = vmatpush3.msra.mxu0 %v57_v38 }
 0x8af   :  { %v727_v22 = vpop.xlane.xlu0 %726 }
 0x8b0   :  { %v728_v23 = vsub.f32 %v722_v19, %v727_v22 }
 0x8b2   :  { %v729_v24 = vmul.f32 1.442695, %v728_v23 }
 0x8b3   :  { %v737_v25 = vpop.permute.xlu0 %736 }
 0x8b4   :  { %1042 = vpow2.f32 %v729_v24  ;;  %994 = vmatpush3.msra.mxu1 %v737_v25 }
 0x8b7   :  { %v818_v42 = vpop.permute.xlu0 %817 }
 0x8c1   :  { %v1043_v26 = vpop.eup %1042 }
 0x8c2   :  { %v731_v27 = vsel %vm231_vm3, %v1043_v26, 0.0 }
 0x8c3   :  { %732 = vadd.xlane.f32.xlu1 %v731_v27 }
 0x8d4   :  { %813 = vrot.lane.b32.xlu1 %v478_v62, %s1115_s18 }
 0x94c   :  { %v733_v28 = vpop.xlane.xlu1 %732 }
 0x94d   :  { %1044 = vrcp.f32 %v733_v28 }
 0x950   :  { %v814_v41 = vpop.permute.xlu1 %813 }
 0x951   :  { %v824_v43 = vsel %vm156_vm2, %v1186_v46, %v814_v41 }
 0x952   :  { %v826_v44 = vsel %vm825_vm4, %v824_v43, %v818_v42 }
 0x95a   :  { %v1045_v30 = vpop.eup %1044 }
 0x95b   :  { %v735_v31 = vmul.f32 %v1045_v30, %v1043_v26 }
 0x95d   :  { %996 = vmatmul.mubr.msk.f32.vlgmr.msra.gmra.mxu1 %vm231_vm3, %v735_v31 }
 0xa1d   :  { %v808_v39 = vpop.f32.mrf.mxu1 }
 0xa1e   :  { %821 = vrot.lane.b32.xlu0 %v808_v39, %s1118_s0 }
 0xa1f   :  { %v997_v40 = vpop.f32.mrf.mxu1 }
 0xa90   :  { %v822_v45 = vpop.permute.xlu0 %821 }
 0xa91   :  { %v828_v47 = vsel %vm827_vm5, %v826_v44, %v822_v45 }
 0xa92   :  { %1015 = vmatmul.mubr.msk.f32.vlgmr.msra.gmra.mxu0 %vm78_vm0, %v828_v47 }
 0xb52   :  { %v898_v0 = vpop.f32.mrf.mxu0 }
 0xb53   :  { %v899_v49 = vadd.f32 %v898_v0, %v65_v48 }
 0xb54   :  { %v1016_v50 = vpop.f32.mrf.mxu0 }
 0xb55   :  { %902 = vst.msk [vmem:[#allocation7] sm:$0xff] %vm78_vm0, %v899_v49 }
 0xb56   :  { %1097 = shalt.err (!%p1094_p0)
}
 0xb57   :  { %912 = dma.vmem_to_hbm [thread:$0]  %s910_s26, 128, %s1244_s2, [#allocation4]  }
 0xb58   :  { %1110 = dma.done.wait [#allocation4], 128  }
 0xb59   :  { %1111 = vsyncadd [#allocation4], 4294967168 }
 0xb5a   :  { %916 = vsyncpa [#allocation3], 1 }
 0xb5b   :  { %917 = vsyncpa [#allocation6], 1 }
 0xb5c   :  { %918 = vsyncpa [#allocation4], 1 }

</bundles_post_ra>
